<compile_context>
chip_gen: v5e
topology: v5e:2x2
jax: 0.10.0
libtpu: 0.0.40
codegen_flags: <defaults>
</compile_context>

<pallas_src>
import functools

import jax
import jax.numpy as jnp
from jax.experimental import pallas as pl
from jax.experimental.pallas import tpu as pltpu


def _src_encoding_kernel(seed_ref, x_ref, enc_ref, o_ref, *,
                         batch, p, apply_dropout):
    # seed_ref: (1,) int32 scalar-prefetch (SMEM)
    # x_ref:    (TS, B*D) VMEM tile of the flattened input
    # enc_ref:  (TS, D)   VMEM tile of the per-row encoding (broadcast over B)
    x = x_ref[...]
    enc = enc_ref[...]
    # Broadcast the encoding over the batch chunks packed along the lane dim:
    # row layout of x is [x[s,0,:], x[s,1,:], ...], so tile enc B times.
    enc_wide = jnp.tile(enc, (1, batch)) if batch > 1 else enc
    y = x + enc_wide.astype(x.dtype)

    if apply_dropout:
        rows, cols = y.shape  # static tile shape
        # Global element index -> unique per tile, so every grid step draws an
        # independent dropout mask even though the seed scalar is shared.
        rid = jax.lax.broadcasted_iota(jnp.int32, (rows, cols), 0)
        cid = jax.lax.broadcasted_iota(jnp.int32, (rows, cols), 1)
        base = pl.program_id(0) * (rows * cols)
        idx = (base + rid * cols + cid).astype(jnp.uint32)

        s = seed_ref[0].astype(jnp.uint32) * jnp.uint32(0x9E3779B9)
        u = idx + s
        # splitmix32-style mixing (pure 32-bit integer ops: VPU-friendly and
        # lowers on every backend, including interpret mode).
        u = u ^ (u >> 16)
        u = u * jnp.uint32(0x7FEB352D)
        u = u ^ (u >> 15)
        u = u * jnp.uint32(0x846CA68B)
        u = u ^ (u >> 16)

        # Drop iff u < threshold; keep-prob = 1 - p, kept values scaled 1/(1-p).
        threshold = jnp.uint32(min(int(round(p * (2.0 ** 32))), 2 ** 32 - 1))
        keep = u >= threshold
        scale = jnp.asarray(1.0 / (1.0 - p), dtype=y.dtype)
        y = jnp.where(keep, y * scale, jnp.zeros_like(y))

    o_ref[...] = y.astype(o_ref.dtype)


def src_encoding_forward(x, emb_table, source_sizes, *, seed=0, dropout_p=0.1,
                         training=True, block_s=None):
    """Pallas implementation of SrcEncoding.forward.

    x:          (S, B, D), S <= sum(source_sizes)
    emb_table:  (n_sources, D) -- the nn.Embedding weight
    """
    S, B, D = x.shape
    BD = B * D

    # Degenerate dropout cases handled statically (threshold math is only valid
    # for 0 < p < 1).
    if training and dropout_p >= 1.0:
        return jnp.zeros_like(x)
    apply_dropout = bool(training and 0.0 < dropout_p < 1.0)

    # --- glue: per-row encoding table, equivalent to SrcEncoding.encoding() ---
    src_ids = jnp.concatenate(
        [jnp.full((sz,), i, dtype=jnp.int32) for i, sz in enumerate(source_sizes)]
    )
    enc = jnp.take(emb_table, src_ids[:S], axis=0).astype(x.dtype)  # (S, D)

    # Lane-dense 2-D view of x (free reshape: trailing dims are contiguous).
    x2d = x.reshape(S, BD)
    itemsize = jnp.dtype(x.dtype).itemsize

    # --- tile over S so the pipeline can double-buffer HBM <-> VMEM ---
    if block_s is None:
        # ~8 MiB total live VMEM across the double-buffered x/enc/out tiles.
        bytes_per_row = (2 * BD + D) * itemsize * 2  # x + out + enc, 2 buffers
        block_s = max(8, min(8 * 1024 * 1024 // max(bytes_per_row, 1), 1024))
    block_s = int(min(block_s, S))
    if block_s < S:
        block_s = max(8, (block_s // 8) * 8)  # sublane-align interior tiles
    grid = (pl.cdiv(S, block_s),)

    seed_arr = jnp.asarray([seed], dtype=jnp.int32)

    kernel = functools.partial(
        _src_encoding_kernel, batch=B, p=float(dropout_p),
        apply_dropout=apply_dropout,
    )

    grid_spec = pltpu.PrefetchScalarGridSpec(
        num_scalar_prefetch=1,  # seed lands in SMEM
        grid=grid,
        in_specs=[
            pl.BlockSpec((block_s, BD), lambda i, seed: (i, 0)),
            pl.BlockSpec((block_s, D), lambda i, seed: (i, 0)),
        ],
        out_specs=pl.BlockSpec((block_s, BD), lambda i, seed: (i, 0)),
    )

    out2d = pl.pallas_call(
        kernel,
        out_shape=jax.ShapeDtypeStruct((S, BD), x.dtype),
        grid_spec=grid_spec,
        compiler_params=pltpu.CompilerParams(
            # Independent output tiles along S -> shard across TCs (v7x megacore).
            dimension_semantics=("parallel",),
            vmem_limit_bytes=32 * 1024 * 1024,
        ),
    )(seed_arr, x2d, enc)

    return out2d.reshape(S, B, D)


if __name__ == "__main__":
    key = jax.random.PRNGKey(0)
    k_x, k_emb = jax.random.split(key)

    d_model = 32
    source_sizes = [6, 10]         # n_sources = 2, sum = 16
    S = sum(source_sizes)          # seq length
    B = 2                          # batch
    dropout_p = 0.1

    x = jax.random.normal(k_x, (S, B, d_model), dtype=jnp.float32)
    emb_table = jax.random.normal(k_emb, (len(source_sizes), d_model),
                                  dtype=jnp.float32)

    # Pure-JAX reference for the deterministic part (x + encoding).
    src_ids = jnp.concatenate(
        [jnp.full((sz,), i, dtype=jnp.int32) for i, sz in enumerate(source_sizes)]
    )
    ref = x + jnp.take(emb_table, src_ids[:S], axis=0)[:, None, :]

    # Eval mode (dropout = identity).  block_s=8 -> grid=(2,) exercises tiling.
    out_eval = src_encoding_forward(x, emb_table, source_sizes,
                                    seed=0, dropout_p=dropout_p,
                                    training=False, block_s=8)
    jax.block_until_ready(out_eval)
    assert jnp.allclose(out_eval, ref, atol=1e-6), "eval-mode mismatch"

    # Training mode (dropout active, deterministic seed).
    out_train = src_encoding_forward(x, emb_table, source_sizes,
                                     seed=1234, dropout_p=dropout_p,
                                     training=True, block_s=8)
    jax.block_until_ready(out_train)

    # Every element is either exactly 0 (dropped) or (x+enc)/(1-p) (kept).
    scale = 1.0 / (1.0 - dropout_p)
    dropped = out_train == 0.0
    kept_err = jnp.where(dropped, 0.0, jnp.abs(out_train - ref * scale))
    assert float(jnp.max(kept_err)) < 1e-4, "train-mode kept-value mismatch"
    n_drop = int(jnp.sum(dropped))
    assert 0 < n_drop < out_train.size, "dropout mask is degenerate"

    print("KERNEL_OK")
</pallas_src>

<mosaic_0001>
module attributes {stable_mosaic.version = 11 : i64} {
  func.func @_src_encoding_kernel(%arg0: i32, %arg1: memref<1xi32, #tpu.memory_space<smem>>, %arg2: memref<8x64xf32, #tpu.memory_space<vmem>>, %arg3: memref<8x32xf32, #tpu.memory_space<vmem>>, %arg4: memref<8x64xf32, #tpu.memory_space<vmem>>) attributes {dimension_semantics = [#tpu.dimension_semantics<parallel>], iteration_bounds = array<i64: 2>, scalar_prefetch = 1 : i64, scratch_operands = 0 : i64, tpu.core_type = #tpu.core_type<tc>, window_params = [{transform_indices = @transform_0, window_bounds = array<i64: 8, 64>}, {transform_indices = @transform_1, window_bounds = array<i64: 8, 32>}, {transform_indices = @transform_2, window_bounds = array<i64: 8, 64>}]} {
    %c0 = arith.constant 0 : index
    %c0_0 = arith.constant 0 : index
    %0 = vector.load %arg2[%c0, %c0_0] : memref<8x64xf32, #tpu.memory_space<vmem>>, vector<8x64xf32>
    %c0_1 = arith.constant 0 : index
    %c0_2 = arith.constant 0 : index
    %1 = vector.load %arg3[%c0_1, %c0_2] : memref<8x32xf32, #tpu.memory_space<vmem>>, vector<8x32xf32>
    %2 = tpu.concatenate %1, %1 in 1 : vector<8x32xf32>, vector<8x32xf32> -> vector<8x64xf32>
    %3 = arith.addf %0, %2 : vector<8x64xf32>
    %c0_3 = arith.constant 0 : index
    %c0_4 = arith.constant 0 : index
    %4 = vector.load %arg4[%c0_3, %c0_4] : memref<8x64xf32, #tpu.memory_space<vmem>>, vector<8x64xf32>
    tpu.vector_store %arg4[%c0_3, %c0_4], %3 {strides = array<i32>} : memref<8x64xf32, #tpu.memory_space<vmem>>, vector<8x64xf32>,
    return
  }
  func.func @transform_0(%arg0: i32, %arg1: memref<1xi32, #tpu.memory_space<smem>>) -> (i32, i32) {
    %c0_i32 = arith.constant 0 : i32
    %c0_i32_0 = arith.constant 0 : i32
    return %arg0, %c0_i32 : i32, i32
  }
  func.func @transform_1(%arg0: i32, %arg1: memref<1xi32, #tpu.memory_space<smem>>) -> (i32, i32) {
    %c0_i32 = arith.constant 0 : i32
    %c0_i32_0 = arith.constant 0 : i32
    return %arg0, %c0_i32 : i32, i32
  }
  func.func @transform_2(%arg0: i32, %arg1: memref<1xi32, #tpu.memory_space<smem>>) -> (i32, i32) {
    %c0_i32 = arith.constant 0 : i32
    %c0_i32_0 = arith.constant 0 : i32
    return %arg0, %c0_i32 : i32, i32
  }
}

</mosaic_0001>

<bundles_post_ra>
// kernel: tpu_custom_call.1
= control target key start
LH: loop header
LB: loop body
LE: loop exit
PB: predicated region body
PF: predicated region fallthrough
CT: control target
= control target key end

     0   :  { %9 = vsyncpa [#allocation5], 0  ;;  %s702_s0 = inlined_call_operand.<no memory space> [shape: s32[1], index: 0, kind: input, shape index: {}]   ;;  %s703_s1 = inlined_call_operand.hbm [shape: f32[16,64], index: 1, kind: input, shape index: {}]   ;;  %s704_s2 = inlined_call_operand.hbm [shape: f32[16,32], index: 2, kind: input, shape index: {}]   ;;  %s705_s3 = inlined_call_operand.hbm [shape: f32[16,64], index: 3, kind: output, shape index: {}]  }
   0x1   :  { %11 = vsyncpa [#allocation5 + $0x1], 0 }
   0x2   :  { %12 = vsyncpa [#allocation8], 0 }
   0x3   :  { %14 = vsyncpa [#allocation8 + $0x1], 0 }
   0x4   :  { %15 = vsyncpa [#allocation6], 0 }
   0x5   :  { %17 = vsyncpa [#allocation6 + $0x1], 0  ;;  %s542_s12 = smov 0   ;;  %s544_s13 = smov 0  }
   0x6   :  { %s546_s0 = smov 0   ;;  %s548_s14 = smov 0  }
   0x7 LB: > { %s563_s15 = sadd.s32 4294967295, %s519_s14   ;;  %s322_s16 = sadd.s32 4294967294, %s519_s14   ;;  %s519_s14 = sphi %s548_s14, %s716_s14   ;;  %s515_s0 = sphi %s546_s0, %s715_s0   ;;  %s511_s13 = sphi %s544_s13, %s714_s13   ;;  %s507_s12 = sphi %s542_s12, %s713_s12  }
   0x8   : > { %s567_s17 = sadd.s32 1, %s519_s14   ;;  %s30_s18 = sadd.s32 1, %s515_s0 }
   0x9   : > { %s27_s19 = ssub.s32 %s519_s14, %s567_s17  ;;  %p37_p0 = scmp.ne.s32.totalorder %s515_s0, %s511_s13 }
   0xa   : > { %p28_p1 = scmp.eq.s32.totalorder %s27_s19, 0  ;;  %p38_p2 = scmp.eq.s32.totalorder %s519_s14, 0 }
   0xb   : > { %p43_p3 = scmp.ne.s32.totalorder %s511_s13, %s507_s12  ;;  %p44_p4 = scmp.eq.s32.totalorder %s563_s15, 0 }
   0xc   : > { %s579_s20 = scalar_select %p28_p1, %s515_s0, %s30_s18  }
   0xd   : > { %p581_p5 = por %p38_p2, %p37_p0  ;;  %p585_p6 = por %p44_p4, %p43_p3 }
   0xe   : > { %p93_p7 = scmp.eq.s32.totalorder %s563_s15, 1  ;;  %p99_p8 = scmp.eq.s32.totalorder %s322_s16, 1 }
   0xf   : > { %p354_p10 = scmp.lt.s32.totalorder %s519_s14, 2  ;;  %s601_s25 = sand.u32 1, %s515_s0  }
  0x10   : > { %p592_p11 = por %p93_p7, %p37_p0  ;;  %p596_p12 = por %p99_p8, %p43_p3 }
  0x11   : > { %s326_s26 = sshll.u32 %s519_s14, 3  ;;  %s325_s27 = sshll.u32 %s601_s25, 3 }
  0x12   : > { %s127_s30 = scalar_lea.hbm %s703_s1, %s326_s26  ;;  %s123_s5 = scalar_lea.vmem [#allocation4], %s325_s27 }
  0x13   : > { %s129_s4 = sshll.u32 %s127_s30, 4  ;;  %s131_s6 = sshll.u32 %s123_s5, 4  ;;  %s130_s4 = int_to_ptr.hbm [resolvable:$true] %s129_s4  ;;  %s132_s6 = int_to_ptr.vmem [resolvable:$true] %s131_s6 }
  0x14   : > { %p610_p13 = pnand %p354_p10, %p581_p5  ;;  %p329_p0 = scmp.ge.s32.totalorder %s519_s14, 1 }
  0x15   : > { %p155_p1 = scmp.lt.s32.totalorder %s519_s14, 3  ;;  %s120_s8 = scalar_lea.sflag [#allocation5], %s601_s25 }
  0x16   : > { %s389_s9 = sshra.s32 %s130_s4, 4  ;;  %p393_p3 = pneg %p610_p13  ;;  %s390_s9 = int_to_ptr.hbm [resolvable:$true] %s389_s9 }
  0x17   : > { %s391_s10 = scalar_lea.hbm %s390_s9, 8  ;;  %s396_s18 = scalar_lea.hbm %s703_s1, 16 }
  0x18   : > { %p392_p2 = scmp.ne.s32.totalorder %s390_s9, %s391_s10  ;;  %p397_p5 = scmp.lt.s32.totalorder %s390_s9, %s703_s1 }
  0x19   : > { %p398_p8 = scmp.lt.s32.totalorder %s396_s18, %s391_s10 }
  0x1a   : > { %p394_p4 = pnand %p393_p3, %p392_p2 }
  0x1b   : > { %p399_p10 = por %p398_p8, %p397_p5 }
  0x1c   : > { %p395_p7 = pneg %p394_p4 }
  0x1e   : > { %p400_p9 = pnand %p399_p10, %p395_p7 }
  0x20   : > { %403 = shalt.err (!%p400_p9)
}
  0x21   : > { %346 = dma.hbm_to_vmem [thread:$0]  (!%p610_p13), %s130_s4, 128, %s132_s6, %s120_s8  }
  0x22   : > { %p634_p2 = pnand %p329_p0, %p155_p1  ;;  %s146_s5 = scalar_lea.hbm %s704_s2, %s326_s26 }
  0x23   : > { %s148_s9 = sshll.u32 %s146_s5, 4  ;;  %s142_s10 = scalar_lea.vmem [#allocation7], %s325_s27  ;;  %s149_s9 = int_to_ptr.hbm [resolvable:$true] %s148_s9 }
  0x24   : > { %s150_s11 = sshll.u32 %s142_s10, 4  ;;  %s139_s16 = scalar_lea.sflag [#allocation8], %s601_s25  ;;  %s151_s11 = int_to_ptr.vmem [resolvable:$true] %s150_s11 }
  0x25   : > { %s419_s18 = sshra.s32 %s149_s9, 4  ;;  %s426_s8 = scalar_lea.hbm %s704_s2, 16  ;;  %s420_s18 = int_to_ptr.hbm [resolvable:$true] %s419_s18 }
  0x26   : > { %s421_s19 = scalar_lea.hbm %s420_s18, 8  ;;  %p427_p4 = scmp.lt.s32.totalorder %s420_s18, %s704_s2 }
  0x27   : > { %p422_p9 = scmp.ne.s32.totalorder %s420_s18, %s421_s19  ;;  %p428_p7 = scmp.lt.s32.totalorder %s426_s8, %s421_s19 }
  0x29   : > { %p424_p0 = pnand %p422_p9, %p393_p3  ;;  %p429_p5 = por %p428_p7, %p427_p4 }
  0x2b   : > { %p425_p1 = pneg %p424_p0 }
  0x2d   : > { %p430_p8 = pnand %p429_p5, %p425_p1 }
  0x2f   : > { %433 = shalt.err (!%p430_p8)
}
  0x30   : > { %349 = dma.hbm_to_vmem [thread:$0]  (!%p610_p13), %s149_s9, 128, %s151_s11, %s139_s16  }
  0x31   : > { %159 = sbr.rel (%p634_p2) target bundleno = 179 (0xb3), region = 28  ;;  %s656_s25 = sand.u32 (!%p634_p2), 1, %s511_s13  }
  0x32   : > { %s330_s27 = sshll.u32 (!%p634_p2), %s656_s25, 3  ;;  %s162_s29 = scalar_lea.sflag (!%p634_p2), [#allocation5], %s656_s25 }
  0x33   : > { %s165_s30 = scalar_lea.vmem (!%p634_p2), [#allocation4], %s330_s27 }
  0x36   : > { %494 = dma.done.wait (%p585_p6), %s162_s29, 128  }
  0x37   : > { %496 = vsyncadd (%p585_p6), %s162_s29, 4294967168  ;;  %s172_s7 = scalar_lea.sflag [#allocation8], %s656_s25  ;;  %s175_s5 = scalar_lea.vmem [#allocation7], %s330_s27 }
  0x38   : > { %498 = dma.done.wait (%p585_p6), %s172_s7, 128  }
  0x39   : > { %500 = vsyncadd (%p585_p6), %s172_s7, 4294967168  ;;  %v203_v0 = vld [vmem:[%s175_s5] sm:$0xff]  ;;  %s521_s28 = smov 32   ;;  %s334_s9 = sshll.u32 %s563_s15, 3  ;;  %vm208_vm0 = vcmask 261120   ;;  %v202_v1 = vld [vmem:[%s165_s30] sm:$0xff] }
  0x3a   : > { %205 = vrot.lane.b32.xlu0 %v203_v0, %s521_s28  ;;  %s224_s16 = scalar_lea.hbm %s705_s3, %s334_s9  ;;  %s201_s18 = scalar_lea.vmem [#allocation9], %s330_s27  ;;  %vm211_vm1 = vcmask 523264  }
  0x3b   : > { %s226_s19 = sshll.u32 %s201_s18, 4  ;;  %s228_s4 = sshll.u32 %s224_s16, 4  ;;  %s227_s19 = int_to_ptr.vmem [resolvable:$true] %s226_s19  ;;  %s229_s4 = int_to_ptr.hbm [resolvable:$true] %s228_s4 }
  0x3c   : > { %s214_s22 = scalar_lea.sflag [#allocation6], %s656_s25  ;;  %s463_s6 = sshra.s32 %s229_s4, 4  ;;  %s464_s6 = int_to_ptr.hbm [resolvable:$true] %s463_s6 }
  0x3d   : > { %s465_s15 = scalar_lea.hbm %s464_s6, 8  ;;  %s469_s26 = scalar_lea.hbm %s705_s3, 16 }
  0x3e   : > { %p466_p6 = scmp.ne.s32.totalorder %s464_s6, %s465_s15  ;;  %p470_p10 = scmp.lt.s32.totalorder %s464_s6, %s705_s3 }
  0x3f   : > { %p471_p2 = scmp.lt.s32.totalorder %s469_s26, %s465_s15 }
  0x40   : > { %p467_p13 = pnand %p466_p6, %p592_p11 }
  0x41   : > { %p472_p9 = por %p471_p2, %p470_p10 }
  0x42   : > { %p468_p3 = pneg %p467_p13 }
  0x44   : > { %p473_p0 = pnand %p472_p9, %p468_p3 }
  0xac   : > { %v206_v2 = vpop.permute.xlu0 %205 }
  0xad   : > { %v209_v3 = vsel %vm208_vm0, %v203_v0, %v206_v2 }
  0xae   : > { %v210_v4 = vadd.f32 %v209_v3, %v202_v1 }
  0xb0   : > { %212 = vst.msk [vmem:[%s201_s18] sm:$0xff] %vm211_vm1, %v210_v4 }
  0xb1   : > { %476 = shalt.err (!%p473_p0)
}
  0xb2   : > { %341 = dma.vmem_to_hbm [thread:$0]  (%p592_p11), %s227_s19, 128, %s229_s4, %s214_s22  }
  0xb3 PF: > { %s240_s25 = sand.u32 1, %s507_s12   ;;  %p712_p1 = scmp.ge.s32.totalorder %s519_s14, 2 }
  0xb4   : > { %s241_s30 = scalar_lea.sflag [#allocation6], %s240_s25 }
  0xb5   : > { %p351_p4 = pnand %p712_p1, %p596_p12 }
  0xb7   : > { %p352_p7 = pneg %p351_p4 }
  0xb9   : > { %502 = dma.done.wait (%p352_p7), %s241_s30, 128  }
  0xba   : > { %504 = vsyncadd (%p352_p7), %s241_s30, 4294967168  ;;  %p20_p5 = scmp.ge.s32.totalorder %s567_s17, 4   ;;  %s713_s12 = smov %s511_s13 }
  0xbb   : > { %s714_s13 = smov %s515_s0  ;;  %s715_s0 = smov %s579_s20 }
  0xbc   : > { %s716_s14 = smov %s567_s17  ;;  %22 = sbr.rel (!%p20_p5) target bundleno = 7 (0x7), region = 86 }
  0xc1   :  { %247 = vsyncpa [#allocation5], 1 }
  0xc2   :  { %249 = vsyncpa [#allocation5 + $0x1], 1 }
  0xc3   :  { %250 = vsyncpa [#allocation8], 1 }
  0xc4   :  { %252 = vsyncpa [#allocation8 + $0x1], 1 }
  0xc5   :  { %253 = vsyncpa [#allocation6], 1 }
  0xc6   :  { %255 = vsyncpa [#allocation6 + $0x1], 1 }

</bundles_post_ra>
